<compile_context>
chip_gen: v7x
topology: tpu7x:2x2x1
jax: 0.10.0
libtpu: 0.0.40
codegen_flags: <defaults>
</compile_context>

<pallas_src>
import functools

import jax
import jax.numpy as jnp
from jax.experimental import pallas as pl
from jax.experimental.pallas import tpu as pltpu


def _swiglu_kernel(x_ref, o_ref, *, beta):
    # x_ref holds BOTH channel halves of the current tile: shape (2, tr, ts).
    # Compute the gate in f32 (EUP sigmoid + VPU muls), cast on the final
    # store.  For f32 inputs the casts are no-ops; for bf16 inputs this keeps
    # the math in f32 (required on v5e which has no bf16 VPU/EUP; compute is
    # hidden under the HBM stream on every generation anyway).
    x1 = x_ref[0].astype(jnp.float32)
    x2 = x_ref[1].astype(jnp.float32)
    gate = x1 * jax.nn.sigmoid(beta * x1)
    o_ref[...] = (gate * x2).astype(o_ref.dtype)


def _choose_slab(ch, hw):
    """Factor the per-half plane (ch*hw elements) into a lane-dense 2-D slab.

    Returns (rows, lanes) with rows * lanes == ch * hw.  When possible the
    lane dim is a multiple of 128 (up to 1024) so every block / store is
    lane-dense even when H*W is not a multiple of 128 (e.g. 7x7) or C/2 < 8.
    """
    p = ch * hw
    if p % 128 == 0:
        k = p // 128
        d = 1
        for cand in range(2, 9):        # widest lane dim <= 1024 that divides p
            if k % cand == 0:
                d = cand
        lanes = 128 * d
        return p // lanes, lanes
    # No lane-dense factorisation exists without an HBM copy: keep the natural
    # (C/2, H*W) axes and let Pallas block masking handle the ragged lane edge.
    return ch, hw


def _pick_tiles(n, rows, lanes, itemsize, target_bytes=2 * 1024 * 1024):
    """Byte-sized (row, lane) tiles: ~target_bytes per OUTPUT block.

    Worst-case live VMEM = double-buffered (input block = 2*tile + output
    block = tile) = 6 * target_bytes ~= 12 MiB.  Row tiles never fall back to
    an unbounded full extent, so awkward shapes cannot blow scoped VMEM.
    """
    sublane = {4: 8, 2: 16, 1: 32}.get(itemsize, 8)

    # Lane tile: full extent when modest (always legal), otherwise a
    # lane-dense multiple of 128 (edge block masked by Pallas if ragged).
    ts = lanes if lanes <= 2048 else 1024

    # Row tile: as many rows as the byte budget allows, in sublane multiples.
    max_rows = max(1, target_bytes // (ts * itemsize))
    if rows <= max_rows:
        tr = rows                                   # full extent: always legal
    else:
        tr = max(sublane, (max_rows // sublane) * sublane)

    # v7x megacore balance: 2 TensorCores share HBM, so make sure there are at
    # least 2 grid steps whenever the row axis is big enough to split.
    steps = n * pl.cdiv(rows, tr) * pl.cdiv(lanes, ts)
    if steps < 2 and rows >= 2 * sublane:
        tr = pl.cdiv(pl.cdiv(rows, 2), sublane) * sublane   # still < rows

    return tr, ts


def swiglu(x, beta=1.0):
    """x: (N, C, H, W), C even. Returns x1 * sigmoid(beta*x1) * x2, shape (N, C//2, H, W)."""
    n, c, h, w = x.shape
    assert c % 2 == 0, "channel dim must be even for SwiGLU chunk(2, dim=1)"
    ch = c // 2

    itemsize = jnp.dtype(x.dtype).itemsize
    rows, lanes = _choose_slab(ch, h * w)
    tr, ts = _pick_tiles(n, rows, lanes, itemsize)

    # Contiguous (free) reshape: (N, C, H, W) -> (N, 2, rows, lanes).  The two
    # channel halves sit at index 0 / 1 of axis 1, so a SINGLE BlockSpec below
    # carries both halves of each tile in one DMA descriptor.
    x4 = x.reshape(n, 2, rows, lanes)

    grid = (n, pl.cdiv(rows, tr), pl.cdiv(lanes, ts))

    kernel = functools.partial(_swiglu_kernel, beta=float(beta))

    out3d = pl.pallas_call(
        kernel,
        out_shape=jax.ShapeDtypeStruct((n, rows, lanes), x.dtype),
        grid=grid,
        in_specs=[
            # One merged spec for both halves: block (2, tr, ts) per step
            # (1 input DMA + 1 output DMA per step instead of 3).
            pl.BlockSpec((None, 2, tr, ts), lambda i, j, k: (i, 0, j, k)),
        ],
        out_specs=pl.BlockSpec((None, tr, ts), lambda i, j, k: (i, j, k)),
        compiler_params=pltpu.CompilerParams(
            # Pure element-wise streaming op: every grid axis is independent,
            # so the grid can shard across both TensorCores on v7x.  Default
            # double buffering is kept on purpose: deeper pipelining would
            # only eat VMEM better spent on bigger blocks.
            dimension_semantics=("parallel", "parallel", "parallel"),
            # ~12 MiB worst-case working set; 32 MiB limit gives headroom on
            # v5e (16 MiB scoped default) and is within physical VMEM on all
            # generations (128/128/64 MiB).
            vmem_limit_bytes=32 * 1024 * 1024,
        ),
    )(x4)

    return out3d.reshape(n, ch, h, w)


def _swiglu_ref(x, beta=1.0):
    ch = x.shape[1] // 2
    x1, x2 = x[:, :ch], x[:, ch:]
    return x1 * jax.nn.sigmoid(beta * x1) * x2


if __name__ == "__main__":
    key = jax.random.PRNGKey(0)
    x = jax.random.normal(key, (2, 4, 16, 16), dtype=jnp.float32)

    out = swiglu(x, beta=1.0)
    out = jax.block_until_ready(out)

    ref = _swiglu_ref(x, beta=1.0)
    assert out.shape == (2, 2, 16, 16)
    assert jnp.allclose(out, ref, atol=1e-5, rtol=1e-5)

    print("KERNEL_OK")
</pallas_src>

<mosaic_0001>
module attributes {stable_mosaic.version = 11 : i64} {
  func.func @_swiglu_kernel(%arg0: i32, %arg1: i32, %arg2: i32, %arg3: memref<1x2x1x512xf32, #tpu.memory_space<vmem>>, %arg4: memref<1x1x512xf32, #tpu.memory_space<vmem>>) attributes {dimension_semantics = [#tpu.dimension_semantics<parallel>, #tpu.dimension_semantics<parallel>, #tpu.dimension_semantics<parallel>], iteration_bounds = array<i64: 2, 1, 1>, scalar_prefetch = 0 : i64, scratch_operands = 0 : i64, tpu.core_type = #tpu.core_type<tc>, window_params = [{transform_indices = @transform_0, window_bounds = array<i64: 1, 2, 1, 512>}, {transform_indices = @transform_1, window_bounds = array<i64: 1, 1, 512>}]} {
    %c0 = arith.constant 0 : index
    %c0_0 = arith.constant 0 : index
    %c0_1 = arith.constant 0 : index
    %c0_2 = arith.constant 0 : index
    %0 = vector.load %arg3[%c0, %c0_0, %c0_1, %c0_2] : memref<1x2x1x512xf32, #tpu.memory_space<vmem>>, vector<1x1x1x512xf32>
    %1 = vector.shape_cast %0 : vector<1x1x1x512xf32> to vector<1x512xf32>
    %c0_3 = arith.constant 0 : index
    %c1 = arith.constant 1 : index
    %c0_4 = arith.constant 0 : index
    %c0_5 = arith.constant 0 : index
    %2 = vector.load %arg3[%c0_3, %c1, %c0_4, %c0_5] : memref<1x2x1x512xf32, #tpu.memory_space<vmem>>, vector<1x1x1x512xf32>
    %3 = vector.shape_cast %2 : vector<1x1x1x512xf32> to vector<1x512xf32>
    %cst = arith.constant 1.000000e+00 : f32
    %4 = vector.broadcast %cst : f32 to vector<1x512xf32>
    %5 = arith.mulf %4, %1 : vector<1x512xf32>
    %6 = arith.negf %5 : vector<1x512xf32>
    %7 = math.exp %6 : vector<1x512xf32>
    %cst_6 = arith.constant 1.000000e+00 : f32
    %8 = vector.broadcast %cst_6 : f32 to vector<1x512xf32>
    %9 = arith.addf %8, %7 : vector<1x512xf32>
    %10 = arith.divf %8, %9 : vector<1x512xf32>
    %11 = arith.mulf %1, %10 : vector<1x512xf32>
    %12 = arith.mulf %11, %3 : vector<1x512xf32>
    %c0_7 = arith.constant 0 : index
    %c0_8 = arith.constant 0 : index
    %c0_9 = arith.constant 0 : index
    %13 = vector.load %arg4[%c0_7, %c0_8, %c0_9] : memref<1x1x512xf32, #tpu.memory_space<vmem>>, vector<1x1x512xf32>
    %14 = vector.shape_cast %13 : vector<1x1x512xf32> to vector<1x512xf32>
    %15 = vector.shape_cast %12 : vector<1x512xf32> to vector<1x1x512xf32>
    tpu.vector_store %arg4[%c0_7, %c0_8, %c0_9], %15 {strides = array<i32>} : memref<1x1x512xf32, #tpu.memory_space<vmem>>, vector<1x1x512xf32>,
    return
  }
  func.func @transform_0(%arg0: i32, %arg1: i32, %arg2: i32) -> (i32, i32, i32, i32) {
    %c0_i32 = arith.constant 0 : i32
    %c0_i32_0 = arith.constant 0 : i32
    return %arg0, %c0_i32, %arg1, %arg2 : i32, i32, i32, i32
  }
  func.func @transform_1(%arg0: i32, %arg1: i32, %arg2: i32) -> (i32, i32, i32) {
    %c0_i32 = arith.constant 0 : i32
    return %arg0, %arg1, %arg2 : i32, i32, i32
  }
}

</mosaic_0001>

<bundles_post_ra>
// kernel: tpu_custom_call.1
= control target key start
LH: loop header
LB: loop body
LE: loop exit
PB: predicated region body
PF: predicated region fallthrough
CT: control target
= control target key end

     0   :  { %6 = vsyncpa [#allocation3], 0  ;;  %s683_s0 = inlined_call_operand.hbm [shape: f32[2,2,1,512], index: 0, kind: input, shape index: {}]   ;;  %s684_s1 = inlined_call_operand.hbm [shape: f32[2,1,512], index: 1, kind: output, shape index: {}]  }
   0x1   :  { %8 = vsyncpa [#allocation3 + $0x1], 0 }
   0x2   :  { %9 = vsyncpa [#allocation4], 0 }
   0x3   :  { %11 = vsyncpa [#allocation4 + $0x1], 0  ;;  %s509_s6 = smov 0   ;;  %s511_s7 = smov 0  }
   0x4   :  { %s513_s8 = smov 0   ;;  %s515_s9 = smov 0  }
   0x5   :  { %s517_s10 = smov 0   ;;  %s519_s11 = smov 0  }
   0x6 LB: > { %s294_s12 = sadd.s32 4294967295, %s493_s11   ;;  %s295_s13 = sadd.s32 4294967294, %s493_s11   ;;  %s493_s11 = sphi %s519_s11, %s17_s11   ;;  %s489_s10 = sphi %s517_s10, %s699_s10   ;;  %s485_s9 = sphi %s515_s9, %s698_s9   ;;  %s481_s8 = sphi %s513_s8, %s697_s8   ;;  %s477_s7 = sphi %s511_s7, %s696_s7   ;;  %s473_s6 = sphi %s509_s6, %s695_s6  }
   0x7   : > { %s36_s14 = sadd.s32 1, %s489_s10  ;;  %s47_s15 = sadd.s32 1, %s481_s8 }
   0x8   : > { %p38_p0 = scmp.ge.s32.totalorder %s36_s14, 2  ;;  %p54_p1 = scmp.ne.s32.totalorder %s481_s8, %s477_s7 }
   0x9   : > { %p55_p2 = scmp.eq.s32.totalorder %s493_s11, 0  ;;  %p60_p3 = scmp.ne.s32.totalorder %s477_s7, %s473_s6 }
   0xa   : > { %s701_s14 = smov (%p38_p0, %s36_s14), 0  ;;  %p61_p5 = scmp.eq.s32.totalorder %s294_s12, 0 }
   0xb   : > { %p550_p4 = por %p55_p2, %p54_p1  ;;  %s40_s17 = ssub.s32 %s489_s10, %s701_s14 }
   0xc   : > { %p88_p6 = scmp.eq.s32.totalorder %s294_s12, 1  ;;  %p45_p7 = scmp.eq.s32.totalorder %s40_s17, 0 }
   0xd   : > { %p556_p8 = por %p61_p5, %p60_p3  ;;  %p94_p10 = scmp.eq.s32.totalorder %s295_s13, 1 }
   0xe   : > { %p560_p9 = por %p88_p6, %p54_p1  ;;  %p325_p13 = scmp.lt.s32.totalorder %s493_s11, 2 }
   0xf   : > { %s565_s20 = scalar_select %p45_p7, %s481_s8, %s47_s15  }
  0x10   : > { %s688_s19 = scalar_select %p560_p9, 1, 0 }
  0x11   : > { %p567_p11 = por %p94_p10, %p60_p3  ;;  %s114_s22 = sand.u32 1, %s481_s8  }
  0x12   : > { %s298_s23 = sshll.u32 %s114_s22, 3  ;;  %s311_s24 = sshll.u32 %s489_s10, 7 }
  0x13   : > { %s689_s21 = scalar_select %p567_p11, 1, 0 }
  0x14   : > { %s578_s27 = scalar_lea.hbm %s683_s0, %s311_s24  ;;  %s118_s28 = scalar_lea.vmem [#allocation2], %s298_s23 }
  0x15   : > { %s129_s29 = sshll.u32 %s118_s28, 4  ;;  %p584_p0 = pnand %p325_p13, %p550_p4  ;;  %s580_s29 = int_to_ptr.vmem [resolvable:$true] %s129_s29 }
  0x16   : > { %s589_s2 = scalar_lea.sflag [#allocation3], %s114_s22  ;;  %s381_s3 = scalar_lea.hbm %s578_s27, 128 }
  0x17   : > { %p382_p2 = scmp.ne.s32.totalorder %s578_s27, %s381_s3  ;;  %p383_p3 = pneg %p584_p0 }
  0x18   : > { %s386_s12 = scalar_lea.hbm %s683_s0, 256  ;;  %p387_p4 = scmp.lt.u32.totalorder %s578_s27, %s683_s0 }
  0x19   : > { %p384_p5 = pnand %p383_p3, %p382_p2  ;;  %p388_p7 = scmp.lt.u32.totalorder %s386_s12, %s381_s3 }
  0x1a   : > { %p390_p13 = scmp.lt.u32.totalorder %s381_s3, %s578_s27 }
  0x1b   : > { %p385_p6 = pneg %p384_p5  ;;  %p389_p10 = por %p388_p7, %p387_p4 }
  0x1d   : > { %p391_p12 = por %p390_p13, %p389_p10 }
  0x1f   : > { %p392_p1 = pnand %p391_p12, %p385_p6 }
  0x21   : > { %395 = shalt.err (!%p392_p1)
}
  0x22   : > { %s396_s16 = scalar_lea.vmem %s580_s29, 128  ;;  %s495_s17 = smov [#allocation2]  }
  0x23   : > { %p397_p2 = scmp.ne.s32.totalorder %s580_s29, %s396_s16  ;;  %s401_s22 = sshll.u32 %s495_s17, 4  ;;  %s402_s22 = int_to_ptr.vmem [resolvable:$false] %s401_s22 }
  0x24   : > { %s403_s23 = scalar_lea.vmem %s402_s22, 256  ;;  %p404_p9 = scmp.lt.s32.totalorder %s580_s29, %s402_s22 }
  0x25   : > { %p399_p5 = pnand %p397_p2, %p383_p3  ;;  %p405_p4 = scmp.lt.s32.totalorder %s403_s23, %s396_s16 }
  0x27   : > { %p400_p11 = pneg %p399_p5  ;;  %p406_p7 = por %p405_p4, %p404_p9 }
  0x29   : > { %p407_p10 = pnand %p406_p7, %p400_p11 }
  0x2b   : > { %410 = shalt.err (!%p407_p10)
}
  0x2c   : > { %s496_s24 = smov 64   ;;  %s497_s25 = smov 4  }
  0x2d   : > { %320 = dma.hbm_to_vmem [thread:$0]  (!%p584_p0), %s578_s27, 128, %s580_s29, %s589_s2, %s496_s24, %s496_s24, %s497_s25  }
  0x2e   : > { %p137_p12 = scmp.lt.s32.totalorder %s493_s11, 3  ;;  %p691_p1 = scmp.ge.s32.totalorder %s493_s11, 1 }
  0x30   : > { %p138_p3 = pnand %p691_p1, %p137_p12 }
  0x31   : > { %s621_s26 = sand.u32 (!%p138_p3), 1, %s477_s7  }
  0x32   : > { %141 = sbr.rel (%p138_p3) target bundleno = 103 (0x67), region = 24  ;;  %s302_s28 = sshll.u32 (!%p138_p3), %s621_s26, 3 }
  0x33   : > { %s144_s3 = scalar_lea.sflag (!%p138_p3), [#allocation3], %s621_s26  ;;  %s147_s4 = scalar_lea.vmem (!%p138_p3), [#allocation2], %s302_s28 }
  0x39   : > { %464 = dma.done.wait (%p556_p8), %s144_s3, 128  }
  0x3a   : > { %466 = vsyncadd (%p556_p8), %s144_s3, 4294967168  ;;  %v168_v0 = vld [vmem:[%s147_s4] sm:$0xf]  ;;  %s303_s27 = sshll.u32 %s621_s26, 2  ;;  %v179_v4 = vlaneseq  ;;  %v304_v6 = vld [vmem:[%s147_s4 + $0x4] sm:$0xf] }
  0x3b   : > { %v305_v1 = vmul.f32 -1.442695, %v168_v0  ;;  %s165_s29 = scalar_lea.vmem [#allocation5], %s303_s27  ;;  %s312_s2 = sshll.u32 %s485_s9, 6 }
  0x3c   : > { %s203_s30 = sshll.u32 %s165_s29, 4  ;;  %vm181_vm0 = vcmp.lt.s32.totalorder %v179_v4, 512  ;;  %s636_s12 = scalar_lea.hbm %s684_s1, %s312_s2  ;;  %s631_s30 = int_to_ptr.vmem [resolvable:$true] %s203_s30 }
  0x3d   : > { %377 = vpow2.f32 %v305_v1  ;;  %s185_s13 = scalar_lea.sflag [#allocation4], %s621_s26  ;;  %s411_s15 = scalar_lea.vmem %s631_s30, 64 }
  0x3e   : > { %p412_p8 = scmp.ne.s32.totalorder %s631_s30, %s411_s15  ;;  %p692_p9 = scmp.ne.s32.totalorder %s688_s19, 0 }
  0x3f   : > { %s498_s9 = smov [#allocation5]  }
  0x40   : > { %p413_p11 = pnand %p412_p8, %p692_p9  ;;  %s415_s16 = sshll.u32 %s498_s9, 4  ;;  %s416_s16 = int_to_ptr.vmem [resolvable:$false] %s415_s16 }
  0x41   : > { %s417_s17 = scalar_lea.vmem %s416_s16, 128  ;;  %p418_p6 = scmp.lt.s32.totalorder %s631_s30, %s416_s16 }
  0x42   : > { %p414_p0 = pneg %p413_p11  ;;  %p419_p13 = scmp.lt.s32.totalorder %s417_s17, %s411_s15 }
  0x44   : > { %p420_p2 = por %p419_p13, %p418_p6 }
  0x46   : > { %p421_p5 = pnand %p420_p2, %p414_p0 }
  0x47   : > { %v378_v2 = vpop.eup %377 }
  0x48   : > { %v174_v3 = vadd.f32 1.0, %v378_v2 }
  0x4a   : > { %379 = vrcp.f32 %v174_v3 }
  0x54   : > { %v380_v5 = vpop.eup %379 }
  0x55   : > { %v177_v7 = vmul.f32 %v380_v5, %v168_v0 }
  0x57   : > { %v178_v8 = vmul.f32 %v304_v6, %v177_v7 }
  0x59   : > { %183 = vst.msk [vmem:[%s165_s29] sm:$0xf] %vm181_vm0, %v178_v8 }
  0x5a   : > { %424 = shalt.err (!%p421_p5)
}
  0x5b   : > { %s425_s22 = scalar_lea.hbm %s636_s12, 64  ;;  %s429_s25 = scalar_lea.hbm %s684_s1, 128 }
  0x5c   : > { %p426_p4 = scmp.ne.s32.totalorder %s636_s12, %s425_s22  ;;  %p430_p12 = scmp.lt.u32.totalorder %s636_s12, %s684_s1 }
  0x5d   : > { %p431_p1 = scmp.lt.u32.totalorder %s429_s25, %s425_s22  ;;  %p433_p8 = scmp.lt.u32.totalorder %s425_s22, %s636_s12 }
  0x5e   : > { %p427_p7 = pnand %p426_p4, %p692_p9 }
  0x5f   : > { %p432_p3 = por %p431_p1, %p430_p12 }
  0x60   : > { %p428_p10 = pneg %p427_p7 }
  0x61   : > { %p434_p11 = por %p433_p8, %p432_p3 }
  0x63   : > { %p435_p0 = pnand %p434_p11, %p428_p10 }
  0x65   : > { %438 = shalt.err (!%p435_p0)
}
  0x66   : > { %315 = dma.vmem_to_hbm [thread:$0]  (%p692_p9), %s631_s30, 64, %s636_s12, %s185_s13  }
  0x67 PF: > { %s215_s3 = sand.u32 1, %s473_s6   ;;  %p693_p6 = scmp.ne.s32.totalorder %s689_s21, 0 }
  0x68   : > { %p694_p13 = scmp.ge.s32.totalorder %s493_s11, 2  ;;  %s216_s4 = scalar_lea.sflag [#allocation4], %s215_s3 }
  0x6a   : > { %p322_p2 = pnand %p694_p13, %p693_p6 }
  0x6c   : > { %468 = dma.done.wait (!%p322_p2), %s216_s4, 64  }
  0x6d   : > { %470 = vsyncadd (!%p322_p2), %s216_s4, 4294967232  ;;  %s17_s11 = sadd.s32 1, %s493_s11   ;;  %s695_s6 = smov %s477_s7 }
  0x6e   : > { %p14_p5 = scmp.ge.s32.totalorder %s17_s11, 4   ;;  %s696_s7 = smov %s481_s8 }
  0x6f   : > { %s697_s8 = smov %s565_s20  ;;  %s698_s9 = smov %s489_s10 }
  0x70   : > { %s699_s10 = smov %s701_s14  ;;  %16 = sbr.rel (!%p14_p5) target bundleno = 6 (0x6), region = 70 }
  0x77   :  { %221 = vsyncpa [#allocation3], 1 }
  0x78   :  { %223 = vsyncpa [#allocation3 + $0x1], 1 }
  0x79   :  { %224 = vsyncpa [#allocation4], 1 }
  0x7a   :  { %226 = vsyncpa [#allocation4 + $0x1], 1 }

</bundles_post_ra>
